<compile_context>
chip_gen: v6e
topology: v6e:2x2x1
jax: 0.10.0
libtpu: 0.0.40
codegen_flags: <defaults>
</compile_context>

<pallas_src>
import functools

import jax
import jax.numpy as jnp
from jax.experimental import pallas as pl
from jax.experimental.pallas import tpu as pltpu

LANE = 128
SUBLANE = 8


def _round_up(n, m):
    return ((n + m - 1) // m) * m


def _cdiv(a, b):
    return -(-a // b)


def mlp_kernel(x_ref, w1_ref, b1_ref, w2_ref, b2_ref, w3_ref, b3_ref, o_ref):
    """One batch tile of: relu(x@W1+b1) -> relu(@W2+b2) -> @W3+b3."""
    compute_dtype = w1_ref.dtype
    # In-kernel cast of the streamed x tile (avoids a separate wrapper-side
    # astype pass that would re-read/re-write x in HBM).
    x = x_ref[...].astype(compute_dtype)
    # Layer 1: Linear + ReLU (bf16/f32 operands, f32 accumulation on the MXU).
    h1 = jnp.dot(x, w1_ref[...], preferred_element_type=jnp.float32) + b1_ref[...]
    h1 = jnp.maximum(h1, 0.0)
    # Layer 2: Linear + ReLU.
    h2 = jnp.dot(h1.astype(compute_dtype), w2_ref[...],
                 preferred_element_type=jnp.float32) + b2_ref[...]
    h2 = jnp.maximum(h2, 0.0)
    # Output layer (no activation): true-width (tb, num_output) f32 store.
    out = jnp.dot(h2.astype(compute_dtype), w3_ref[...],
                  preferred_element_type=jnp.float32) + b3_ref[...]
    o_ref[...] = out.astype(o_ref.dtype)


def _pick_batch_tile(B, num_input, h_pad, x_itemsize, batch_tile):
    # >= 2 grid steps whenever B allows it, so ("parallel",) actually splits
    # the batch across v7x's two TensorCores; tile is a multiple of 8 sublanes.
    tb = min(batch_tile, max(SUBLANE, _round_up(_cdiv(B, 2), SUBLANE)))

    # Budget the double-buffered x tile plus the compiler-managed (tb, h_pad)
    # intermediates (h1/h2/out in f32 + their bf16 casts) to ~24 MiB so the
    # pipeline fits comfortably under v7x's 64 MiB VMEM.
    def footprint(t):
        return 2 * t * num_input * x_itemsize + t * h_pad * (3 * 4 + 2 * 2)

    while tb > SUBLANE and footprint(tb) > 24 * 1024 * 1024:
        tb = max(SUBLANE, _round_up(tb // 2, SUBLANE))
    return tb


@functools.partial(jax.jit, static_argnames=("use_bf16", "batch_tile"))
def network_forward(x, params, *, use_bf16=True, batch_tile=8192):
    w1, b1, w2, b2, w3, b3 = params
    B, num_input = x.shape
    hidden = w1.shape[1]
    num_output = w3.shape[1]

    # Hidden width zero-padded to a full 128-lane vreg; padded hidden units are
    # ReLU(0)=0 so they contribute nothing.  The output layer keeps its true
    # width so only useful bytes are written to HBM.
    h_pad = _round_up(hidden, LANE)
    compute_dtype = jnp.bfloat16 if use_bf16 else jnp.float32

    w1p = jnp.zeros((num_input, h_pad), compute_dtype).at[:, :hidden].set(
        w1.astype(compute_dtype))
    b1p = jnp.zeros((1, h_pad), jnp.float32).at[:, :hidden].set(b1)
    w2p = jnp.zeros((h_pad, h_pad), compute_dtype).at[:hidden, :hidden].set(
        w2.astype(compute_dtype))
    b2p = jnp.zeros((1, h_pad), jnp.float32).at[:, :hidden].set(b2)
    w3p = jnp.zeros((h_pad, num_output), compute_dtype).at[:hidden, :].set(
        w3.astype(compute_dtype))
    b3p = b3.astype(jnp.float32).reshape(1, num_output)

    tb = _pick_batch_tile(B, num_input, h_pad, x.dtype.itemsize, batch_tile)
    grid = (_cdiv(B, tb),)  # partial last block handled by Pallas (no jnp.pad)

    flops = 2 * B * (num_input * h_pad + h_pad * h_pad + h_pad * num_output)
    bytes_accessed = (
        x.size * x.dtype.itemsize
        + B * num_output * 4
        + sum(a.size * a.dtype.itemsize for a in (w1p, b1p, w2p, b2p, w3p, b3p)))

    out = pl.pallas_call(
        mlp_kernel,
        out_shape=jax.ShapeDtypeStruct((B, num_output), jnp.float32),
        grid_spec=pltpu.PrefetchScalarGridSpec(
            num_scalar_prefetch=0,
            grid=grid,
            in_specs=[
                # Streamed batch tile (caller dtype; cast happens in-kernel).
                pl.BlockSpec((tb, num_input), lambda i: (i, 0)),
                # Weights / biases: constant index_map -> resident in VMEM.
                pl.BlockSpec((num_input, h_pad), lambda i: (0, 0)),
                pl.BlockSpec((1, h_pad), lambda i: (0, 0)),
                pl.BlockSpec((h_pad, h_pad), lambda i: (0, 0)),
                pl.BlockSpec((1, h_pad), lambda i: (0, 0)),
                pl.BlockSpec((h_pad, num_output), lambda i: (0, 0)),
                pl.BlockSpec((1, num_output), lambda i: (0, 0)),
            ],
            out_specs=pl.BlockSpec((tb, num_output), lambda i: (i, 0)),
        ),
        compiler_params=pltpu.CompilerParams(
            dimension_semantics=("parallel",),      # megacore split on v7x
            vmem_limit_bytes=32 * 1024 * 1024,      # explicit (v5e default is 16 MiB)
        ),
        cost_estimate=pl.CostEstimate(
            flops=flops, transcendentals=0, bytes_accessed=bytes_accessed),
    )(x, w1p, b1p, w2p, b2p, w3p, b3p)

    return out


def init_params(key, num_input, num_output, hidden=10):
    """Deterministic synthetic init (mimics nn.Linear's uniform fan-in init)."""
    ks = jax.random.split(key, 6)

    def linear(kw, kb, fan_in, fan_out):
        bound = 1.0 / jnp.sqrt(jnp.float32(fan_in))
        w = jax.random.uniform(kw, (fan_in, fan_out), jnp.float32, -bound, bound)
        b = jax.random.uniform(kb, (1, fan_out), jnp.float32, -bound, bound)
        return w, b

    w1, b1 = linear(ks[0], ks[1], num_input, hidden)
    w2, b2 = linear(ks[2], ks[3], hidden, hidden)
    w3, b3 = linear(ks[4], ks[5], hidden, num_output)
    return (w1, b1, w2, b2, w3, b3)


def reference_forward(x, params, compute_dtype=jnp.float32):
    """Plain-JAX reference; matmul operands rounded to compute_dtype so the
    bf16 kernel path can be checked apples-to-apples (f32 accumulation)."""
    w1, b1, w2, b2, w3, b3 = params

    def lin(a, w, b):
        return jnp.dot(a.astype(compute_dtype), w.astype(compute_dtype),
                       preferred_element_type=jnp.float32) + b

    h1 = jnp.maximum(lin(x, w1, b1), 0.0)
    h2 = jnp.maximum(lin(h1, w2, b2), 0.0)
    return lin(h2, w3, b3)


if __name__ == "__main__":
    key = jax.random.PRNGKey(0)
    kx, kp = jax.random.split(key)
    kx1, kx2 = jax.random.split(kx)

    B, num_input, num_output = 8, 32, 4
    x = jax.random.normal(kx1, (B, num_input), jnp.float32)
    params = init_params(kp, num_input, num_output)

    # f32 path: tight check vs. plain-JAX reference.
    out_f32 = jax.block_until_ready(network_forward(x, params, use_bf16=False))
    ref_f32 = reference_forward(x, params, jnp.float32)
    assert out_f32.shape == (B, num_output)
    assert jnp.allclose(out_f32, ref_f32, atol=1e-5, rtol=1e-5)

    # bf16-operand path (HBM-bandwidth optimization): compare against a
    # reference that rounds the matmul operands identically.
    out_bf16 = jax.block_until_ready(network_forward(x, params, use_bf16=True))
    ref_bf16 = reference_forward(x, params, jnp.bfloat16)
    assert out_bf16.shape == (B, num_output)
    assert jnp.allclose(out_bf16, ref_bf16, atol=1e-3, rtol=1e-3)

    # Ragged batch (not a multiple of the tile): handled by the grid's partial
    # last block — no wrapper-side jnp.pad copy.
    B2 = 13
    x2 = jax.random.normal(kx2, (B2, num_input), jnp.float32)
    out2 = jax.block_until_ready(network_forward(x2, params, use_bf16=False))
    ref2 = reference_forward(x2, params, jnp.float32)
    assert out2.shape == (B2, num_output)
    assert jnp.allclose(out2, ref2, atol=1e-5, rtol=1e-5)

    print("KERNEL_OK")
</pallas_src>

<mosaic_0001>
module attributes {stable_mosaic.version = 11 : i64} {
  func.func @mlp_kernel(%arg0: i32, %arg1: memref<8x32xf32, #tpu.memory_space<vmem>>, %arg2: memref<32x128xf32, #tpu.memory_space<vmem>>, %arg3: memref<1x128xf32, #tpu.memory_space<vmem>>, %arg4: memref<128x128xf32, #tpu.memory_space<vmem>>, %arg5: memref<1x128xf32, #tpu.memory_space<vmem>>, %arg6: memref<128x4xf32, #tpu.memory_space<vmem>>, %arg7: memref<1x4xf32, #tpu.memory_space<vmem>>, %arg8: memref<8x4xf32, #tpu.memory_space<vmem>>) attributes {dimension_semantics = [#tpu.dimension_semantics<parallel>], iteration_bounds = array<i64: 1>, scalar_prefetch = 0 : i64, scratch_operands = 0 : i64, tpu.core_type = #tpu.core_type<tc>, window_params = [{transform_indices = @transform_0, window_bounds = array<i64: 8, 32>}, {pipeline_mode = #tpu.pipeline_mode<synchronous>, transform_indices = @transform_1, window_bounds = array<i64: 32, 128>}, {pipeline_mode = #tpu.pipeline_mode<synchronous>, transform_indices = @transform_2, window_bounds = array<i64: 1, 128>}, {pipeline_mode = #tpu.pipeline_mode<synchronous>, transform_indices = @transform_3, window_bounds = array<i64: 128, 128>}, {pipeline_mode = #tpu.pipeline_mode<synchronous>, transform_indices = @transform_4, window_bounds = array<i64: 1, 128>}, {pipeline_mode = #tpu.pipeline_mode<synchronous>, transform_indices = @transform_5, window_bounds = array<i64: 128, 4>}, {pipeline_mode = #tpu.pipeline_mode<synchronous>, transform_indices = @transform_6, window_bounds = array<i64: 1, 4>}, {transform_indices = @transform_7, window_bounds = array<i64: 8, 4>}]} {
    %c0 = arith.constant 0 : index
    %c0_0 = arith.constant 0 : index
    %0 = vector.load %arg1[%c0, %c0_0] : memref<8x32xf32, #tpu.memory_space<vmem>>, vector<8x32xf32>
    %c0_1 = arith.constant 0 : index
    %c0_2 = arith.constant 0 : index
    %1 = vector.load %arg2[%c0_1, %c0_2] : memref<32x128xf32, #tpu.memory_space<vmem>>, vector<32x128xf32>
    %cst = arith.constant dense<0.000000e+00> : vector<8x128xf32>
    %2 = tpu.matmul %0, %1, %cst {dimension_numbers = #tpu.dot_dimension_numbers<[1], [0], [0], [1], [0, 0, 1, 1], [], []>} : vector<8x32xf32>, vector<32x128xf32>, vector<8x128xf32> -> vector<8x128xf32>
    %c0_3 = arith.constant 0 : index
    %c0_4 = arith.constant 0 : index
    %3 = vector.load %arg3[%c0_3, %c0_4] : memref<1x128xf32, #tpu.memory_space<vmem>>, vector<1x128xf32>
    %4 = vector.broadcast %3 : vector<1x128xf32> to vector<8x128xf32>
    %5 = arith.addf %2, %4 : vector<8x128xf32>
    %cst_5 = arith.constant 0.000000e+00 : f32
    %6 = vector.broadcast %cst_5 : f32 to vector<8x128xf32>
    %7 = arith.maximumf %5, %6 : vector<8x128xf32>
    %c0_6 = arith.constant 0 : index
    %c0_7 = arith.constant 0 : index
    %8 = vector.load %arg4[%c0_6, %c0_7] : memref<128x128xf32, #tpu.memory_space<vmem>>, vector<128x128xf32>
    %cst_8 = arith.constant dense<0.000000e+00> : vector<8x128xf32>
    %9 = tpu.matmul %7, %8, %cst_8 {dimension_numbers = #tpu.dot_dimension_numbers<[1], [0], [0], [1], [0, 0, 1, 1], [], []>} : vector<8x128xf32>, vector<128x128xf32>, vector<8x128xf32> -> vector<8x128xf32>
    %c0_9 = arith.constant 0 : index
    %c0_10 = arith.constant 0 : index
    %10 = vector.load %arg5[%c0_9, %c0_10] : memref<1x128xf32, #tpu.memory_space<vmem>>, vector<1x128xf32>
    %11 = vector.broadcast %10 : vector<1x128xf32> to vector<8x128xf32>
    %12 = arith.addf %9, %11 : vector<8x128xf32>
    %cst_11 = arith.constant 0.000000e+00 : f32
    %13 = vector.broadcast %cst_11 : f32 to vector<8x128xf32>
    %14 = arith.maximumf %12, %13 : vector<8x128xf32>
    %c0_12 = arith.constant 0 : index
    %c0_13 = arith.constant 0 : index
    %15 = vector.load %arg6[%c0_12, %c0_13] : memref<128x4xf32, #tpu.memory_space<vmem>>, vector<128x4xf32>
    %cst_14 = arith.constant dense<0.000000e+00> : vector<8x4xf32>
    %16 = tpu.matmul %14, %15, %cst_14 {dimension_numbers = #tpu.dot_dimension_numbers<[1], [0], [0], [1], [0, 0, 1, 1], [], []>} : vector<8x128xf32>, vector<128x4xf32>, vector<8x4xf32> -> vector<8x4xf32>
    %c0_15 = arith.constant 0 : index
    %c0_16 = arith.constant 0 : index
    %17 = vector.load %arg7[%c0_15, %c0_16] : memref<1x4xf32, #tpu.memory_space<vmem>>, vector<1x4xf32>
    %18 = vector.broadcast %17 : vector<1x4xf32> to vector<8x4xf32>
    %19 = arith.addf %16, %18 : vector<8x4xf32>
    %c0_17 = arith.constant 0 : index
    %c0_18 = arith.constant 0 : index
    %20 = vector.load %arg8[%c0_17, %c0_18] : memref<8x4xf32, #tpu.memory_space<vmem>>, vector<8x4xf32>
    tpu.vector_store %arg8[%c0_17, %c0_18], %19 {strides = array<i32>} : memref<8x4xf32, #tpu.memory_space<vmem>>, vector<8x4xf32>,
    return
  }
  func.func @transform_0(%arg0: i32) -> (i32, i32) {
    %c0_i32 = arith.constant 0 : i32
    %c0_i32_0 = arith.constant 0 : i32
    return %arg0, %c0_i32 : i32, i32
  }
  func.func @transform_1(%arg0: i32) -> (i32, i32) {
    %c0_i32 = arith.constant 0 : i32
    %c0_i32_0 = arith.constant 0 : i32
    %c0_i32_1 = arith.constant 0 : i32
    return %c0_i32, %c0_i32_0 : i32, i32
  }
  func.func @transform_2(%arg0: i32) -> (i32, i32) {
    %c0_i32 = arith.constant 0 : i32
    %c0_i32_0 = arith.constant 0 : i32
    %c0_i32_1 = arith.constant 0 : i32
    return %c0_i32, %c0_i32_0 : i32, i32
  }
  func.func @transform_3(%arg0: i32) -> (i32, i32) {
    %c0_i32 = arith.constant 0 : i32
    %c0_i32_0 = arith.constant 0 : i32
    %c0_i32_1 = arith.constant 0 : i32
    return %c0_i32, %c0_i32_0 : i32, i32
  }
  func.func @transform_4(%arg0: i32) -> (i32, i32) {
    %c0_i32 = arith.constant 0 : i32
    %c0_i32_0 = arith.constant 0 : i32
    %c0_i32_1 = arith.constant 0 : i32
    return %c0_i32, %c0_i32_0 : i32, i32
  }
  func.func @transform_5(%arg0: i32) -> (i32, i32) {
    %c0_i32 = arith.constant 0 : i32
    %c0_i32_0 = arith.constant 0 : i32
    %c0_i32_1 = arith.constant 0 : i32
    return %c0_i32, %c0_i32_0 : i32, i32
  }
  func.func @transform_6(%arg0: i32) -> (i32, i32) {
    %c0_i32 = arith.constant 0 : i32
    %c0_i32_0 = arith.constant 0 : i32
    %c0_i32_1 = arith.constant 0 : i32
    return %c0_i32, %c0_i32_0 : i32, i32
  }
  func.func @transform_7(%arg0: i32) -> (i32, i32) {
    %c0_i32 = arith.constant 0 : i32
    %c0_i32_0 = arith.constant 0 : i32
    return %arg0, %c0_i32 : i32, i32
  }
}

</mosaic_0001>

<bundles_post_ra>
// kernel: network_forward.1
= control target key start
LH: loop header
LB: loop body
LE: loop exit
PB: predicated region body
PF: predicated region fallthrough
CT: control target
= control target key end

     0   :  { %v432_v0 = vmov 0.0   ;;  %vm433_vm0 = vmmov 0   ;;  %vm38_vm1 = vcmask 261120   ;;  %vm300_vm2 = vcmask 31744   ;;  %s639_s1 = inlined_call_operand.vmem [shape: f32[32,128], index: 1, kind: input, shape index: {}]   ;;  %s640_s3 = inlined_call_operand.vmem [shape: f32[128,128], index: 3, kind: input, shape index: {}]   ;;  %s641_s0 = inlined_call_operand.vmem [shape: f32[8,32], index: 0, kind: input, shape index: {}]   ;;  %s642_s5 = inlined_call_operand.vmem [shape: f32[128,4], index: 5, kind: input, shape index: {}]   ;;  %s643_s2 = inlined_call_operand.vmem [shape: f32[1,128], index: 2, kind: input, shape index: {}]   ;;  %s644_s4 = inlined_call_operand.vmem [shape: f32[1,128], index: 4, kind: input, shape index: {}]   ;;  %s645_s6 = inlined_call_operand.vmem [shape: f32[1,4], index: 6, kind: input, shape index: {}]   ;;  %s646_s7 = inlined_call_operand.vmem [shape: f32[8,4], index: 7, kind: output, shape index: {}]  }
   0x1   :  { %349 = vmatprep.subr.mxu0 %v432_v0  ;;  %v30_v1 = vld [vmem:[%s639_s1 + $0x18] sm:$0xff]  ;;  %v29_v2 = vld [vmem:[%s639_s1 + $0x10] sm:$0xff]  ;;  %357 = vmatprep.mubr.msk.f32.mxu0 %vm433_vm0, %v432_v0  ;;  %v28_v4 = vld [vmem:[%s639_s1 + $0x8] sm:$0xff] }
   0x2   :  { %350 = vmatpush3.msra.mxu0 %v30_v1  ;;  %360 = vmatprep.subr.mxu1 %v432_v0  ;;  %v128_v3 = vld [vmem:[%s640_s3 + $0x78] sm:$0xff]  ;;  %v127_v5 = vld [vmem:[%s640_s3 + $0x70] sm:$0xff]  ;;  %v126_v6 = vld [vmem:[%s640_s3 + $0x68] sm:$0xff] }
   0x3   :  { %351 = vmatprep.subr.mxu0 %v432_v0  ;;  %361 = vmatpush3.msra.mxu1 %v128_v3  ;;  %v27_v7 = vld [vmem:[%s639_s1] sm:$0xff]  ;;  %v124_v10 = vld [vmem:[%s640_s3 + $0x58] sm:$0xff]  ;;  %v123_v11 = vld [vmem:[%s640_s3 + $0x50] sm:$0xff] }
   0x4   :  { %352 = vmatpush3.msra.mxu0 %v29_v2  ;;  %362 = vmatprep.subr.mxu1 %v432_v0  ;;  %v26_v8 = vld [vmem:[%s641_s0] sm:$0xff]  ;;  %v122_v12 = vld [vmem:[%s640_s3 + $0x48] sm:$0xff]  ;;  %v120_v14 = vld [vmem:[%s640_s3 + $0x38] sm:$0xff] }
   0x5   :  { %353 = vmatprep.subr.mxu0 %v432_v0  ;;  %363 = vmatpush3.msra.mxu1 %v127_v5  ;;  %v125_v9 = vld [vmem:[%s640_s3 + $0x60] sm:$0xff]  ;;  %v119_v15 = vld [vmem:[%s640_s3 + $0x30] sm:$0xff]  ;;  %v118_v16 = vld [vmem:[%s640_s3 + $0x28] sm:$0xff] }
   0x6   :  { %354 = vmatpush3.msra.mxu0 %v28_v4  ;;  %364 = vmatprep.subr.mxu1 %v432_v0  ;;  %v121_v13 = vld [vmem:[%s640_s3 + $0x40] sm:$0xff]  ;;  %v116_v18 = vld [vmem:[%s640_s3 + $0x18] sm:$0xff]  ;;  %v115_v19 = vld [vmem:[%s640_s3 + $0x10] sm:$0xff] }
   0x7   :  { %355 = vmatprep.subr.mxu0 %v432_v0  ;;  %365 = vmatpush3.msra.mxu1 %v126_v6  ;;  %v117_v17 = vld [vmem:[%s640_s3 + $0x20] sm:$0xff]  ;;  %v114_v20 = vld [vmem:[%s640_s3 + $0x8] sm:$0xff]  ;;  %v222_v22 = vld [vmem:[%s642_s5 + $0x78] sm:$0xff] }
   0x8   :  { %356 = vmatpush3.msra.mxu0 %v27_v7  ;;  %366 = vmatprep.subr.mxu1 %v432_v0  ;;  %v113_v21 = vld [vmem:[%s640_s3] sm:$0xff]  ;;  %v221_v23 = vld [vmem:[%s642_s5 + $0x70] sm:$0xff]  ;;  %v220_v24 = vld [vmem:[%s642_s5 + $0x68] sm:$0xff] }
   0x9   :  { %358 = vmatmul.mubr.msk.f32.vlgmr.msra.gmra.mxu0 %vm38_vm1, %v26_v8  ;;  %367 = vmatpush3.msra.mxu1 %v125_v9  ;;  %v219_v25 = vld [vmem:[%s642_s5 + $0x60] sm:$0xff]  ;;  %v218_v26 = vld [vmem:[%s642_s5 + $0x58] sm:$0xff]  ;;  %v217_v27 = vld [vmem:[%s642_s5 + $0x50] sm:$0xff] }
   0xa   :  { %368 = vmatprep.subr.mxu1 %v432_v0  ;;  %392 = vmatprep.mubr.msk.f32.mxu1 %vm433_vm0, %v432_v0  ;;  %v216_v28 = vld [vmem:[%s642_s5 + $0x48] sm:$0xff]  ;;  %v215_v29 = vld [vmem:[%s642_s5 + $0x40] sm:$0xff]  ;;  %v214_v30 = vld [vmem:[%s642_s5 + $0x38] sm:$0xff] }
   0xb   :  { %369 = vmatpush3.msra.mxu1 %v124_v10  ;;  %395 = vmatprep.subr.mxu0 %v432_v0  ;;  %v213_v31 = vld [vmem:[%s642_s5 + $0x30] sm:$0xff]  ;;  %v212_v32 = vld [vmem:[%s642_s5 + $0x28] sm:$0xff]  ;;  %v211_v33 = vld [vmem:[%s642_s5 + $0x20] sm:$0xff] }
   0xc   :  { %370 = vmatprep.subr.mxu1 %v432_v0  ;;  %427 = vmatprep.mubr.msk.f32.mxu0 %vm433_vm0, %v432_v0  ;;  %v210_v34 = vld [vmem:[%s642_s5 + $0x18] sm:$0xff]  ;;  %v306_v35 = vld [vmem:[%s643_s2] ss:$0 sm:$0xff]  ;;  %v209_v40 = vld [vmem:[%s642_s5 + $0x10] sm:$0xff] }
   0xd   :  { %371 = vmatpush3.msra.mxu1 %v123_v11  ;;  %396 = vmatpush3.msra.mxu0 %v222_v22  ;;  %v208_v41 = vld [vmem:[%s642_s5 + $0x8] sm:$0xff]  ;;  %v207_v42 = vld [vmem:[%s642_s5] sm:$0xff] }
   0xe   :  { %372 = vmatprep.subr.mxu1 %v432_v0  ;;  %397 = vmatprep.subr.mxu0 %v432_v0  ;;  %v308_v43 = vld [vmem:[%s644_s4] ss:$0 sm:$0xff] }
   0xf   :  { %373 = vmatpush3.msra.mxu1 %v122_v12  ;;  %398 = vmatpush3.msra.mxu0 %v221_v23  ;;  %v309_v48 = vld [vmem:[%s645_s6] ss:$0 sm:$0xff] }
  0x10   :  { %374 = vmatprep.subr.mxu1 %v432_v0  ;;  %399 = vmatprep.subr.mxu0 %v432_v0 }
  0x11   :  { %375 = vmatpush3.msra.mxu1 %v121_v13  ;;  %400 = vmatpush3.msra.mxu0 %v220_v24 }
  0x12   :  { %376 = vmatprep.subr.mxu1 %v432_v0  ;;  %401 = vmatprep.subr.mxu0 %v432_v0 }
  0x13   :  { %377 = vmatpush3.msra.mxu1 %v120_v14  ;;  %402 = vmatpush3.msra.mxu0 %v219_v25 }
  0x14   :  { %378 = vmatprep.subr.mxu1 %v432_v0  ;;  %403 = vmatprep.subr.mxu0 %v432_v0 }
  0x15   :  { %379 = vmatpush3.msra.mxu1 %v119_v15  ;;  %404 = vmatpush3.msra.mxu0 %v218_v26 }
  0x16   :  { %380 = vmatprep.subr.mxu1 %v432_v0  ;;  %405 = vmatprep.subr.mxu0 %v432_v0 }
  0x17   :  { %381 = vmatpush3.msra.mxu1 %v118_v16  ;;  %406 = vmatpush3.msra.mxu0 %v217_v27 }
  0x18   :  { %382 = vmatprep.subr.mxu1 %v432_v0  ;;  %407 = vmatprep.subr.mxu0 %v432_v0 }
  0x19   :  { %383 = vmatpush3.msra.mxu1 %v117_v17  ;;  %408 = vmatpush3.msra.mxu0 %v216_v28 }
  0x1a   :  { %384 = vmatprep.subr.mxu1 %v432_v0  ;;  %409 = vmatprep.subr.mxu0 %v432_v0 }
  0x1b   :  { %385 = vmatpush3.msra.mxu1 %v116_v18  ;;  %410 = vmatpush3.msra.mxu0 %v215_v29 }
  0x1c   :  { %386 = vmatprep.subr.mxu1 %v432_v0  ;;  %411 = vmatprep.subr.mxu0 %v432_v0 }
  0x1d   :  { %387 = vmatpush3.msra.mxu1 %v115_v19  ;;  %412 = vmatpush3.msra.mxu0 %v214_v30 }
  0x1e   :  { %388 = vmatprep.subr.mxu1 %v432_v0  ;;  %413 = vmatprep.subr.mxu0 %v432_v0 }
  0x1f   :  { %389 = vmatpush3.msra.mxu1 %v114_v20  ;;  %414 = vmatpush3.msra.mxu0 %v213_v31 }
  0x20   :  { %390 = vmatprep.subr.mxu1 %v432_v0  ;;  %415 = vmatprep.subr.mxu0 %v432_v0 }
  0x21   :  { %391 = vmatpush3.msra.mxu1 %v113_v21  ;;  %416 = vmatpush3.msra.mxu0 %v212_v32 }
  0x22   :  { %417 = vmatprep.subr.mxu0 %v432_v0 }
  0x23   :  { %418 = vmatpush3.msra.mxu0 %v211_v33 }
  0x24   :  { %419 = vmatprep.subr.mxu0 %v432_v0 }
  0x25   :  { %420 = vmatpush3.msra.mxu0 %v210_v34 }
  0x26   :  { %421 = vmatprep.subr.mxu0 %v432_v0 }
  0x27   :  { %422 = vmatpush3.msra.mxu0 %v209_v40 }
  0x28   :  { %423 = vmatprep.subr.mxu0 %v432_v0 }
  0x29   :  { %424 = vmatpush3.msra.mxu0 %v208_v41 }
  0x2a   :  { %425 = vmatprep.subr.mxu0 %v432_v0 }
  0x2b   :  { %426 = vmatpush3.msra.mxu0 %v207_v42 }
  0xc9   :  { %v108_v36 = vpop.f32.mrf.mxu0 }
  0xca   :  { %v109_v37 = vadd.f32 %v306_v35, %v108_v36 }
  0xcb   :  { %v359_v38 = vpop.f32.mrf.mxu0 }
  0xcc   :  { %v112_v39 = vmax.f32 %v109_v37, 0.0 }
  0xce   :  { %393 = vmatmul.mubr.f32.vlgmr.msra.gmra.mxu1 %v112_v39 }
 0x18e   :  { %v202_v44 = vpop.f32.mrf.mxu1 }
 0x18f   :  { %v203_v45 = vadd.f32 %v308_v43, %v202_v44 }
 0x190   :  { %v394_v46 = vpop.f32.mrf.mxu1 }
 0x191   :  { %v206_v47 = vmax.f32 %v203_v45, 0.0 }
 0x193   :  { %428 = vmatmul.mubr.f32.vlgmr.msra.gmra.mxu0 %v206_v47 }
 0x253   :  { %v296_v49 = vpop.f32.mrf.mxu0 }
 0x254   :  { %v297_v50 = vadd.f32 %v309_v48, %v296_v49 }
 0x255   :  { %v429_v51 = vpop.f32.mrf.mxu0 }
 0x256   :  { %301 = vst.msk [vmem:[%s646_s7] sm:$0xff] %vm300_vm2, %v297_v50 }

</bundles_post_ra>
